<compile_context>
chip_gen: v7x
topology: tpu7x:2x2x1
jax: 0.10.0
libtpu: 0.0.40
codegen_flags: <defaults>
</compile_context>

<pallas_src>
import functools

import jax
import jax.numpy as jnp
from jax.experimental import pallas as pl
from jax.experimental.pallas import tpu as pltpu


_LANE = 128
_SUBLANE = 8
_VMEM_BUDGET_BYTES = 40 * 1024 * 1024   # keeps headroom on v7x (64 MiB physical)
_VMEM_LIMIT_BYTES = 64 * 1024 * 1024


def _round_up(x, m):
    return (x + m - 1) // m * m


def _pad_to(a, shape):
    pads = [(0, t - s) for s, t in zip(a.shape, shape)]
    if all(p == (0, 0) for p in pads):
        return a
    return jnp.pad(a, pads)


def _vmem_bytes(bb, d_in, d1, d2, d_out, param_bufs):
    # x tile (bf16) + out tile (f32), double-buffered by the pipeline.
    act = bb * d_in * 2 * 2 + bb * d_out * 4 * 2
    wts = (d_in * d1 + d1 * d2 + d2 * d_out) * 2 * param_bufs
    bias = (d1 + d2 + d_out) * 4 * param_bufs
    return act + wts + bias


def mlp_kernel(x_ref, w1_ref, b1_ref, w2_ref, b2_ref, w3_ref, b3_ref, o_ref,
               *, valid_out_dim):
    # Layer 1: bf16 x bf16 matmul -> f32 accumulation; bias + ReLU in f32.
    h1 = jnp.dot(x_ref[...], w1_ref[...], preferred_element_type=jnp.float32)
    h1 = jnp.maximum(h1 + b1_ref[...], 0.0).astype(w2_ref.dtype)
    # Layer 2
    h2 = jnp.dot(h1, w2_ref[...], preferred_element_type=jnp.float32)
    h2 = jnp.maximum(h2 + b2_ref[...], 0.0).astype(w3_ref.dtype)
    # Layer 3
    h3 = jnp.dot(h2, w3_ref[...], preferred_element_type=jnp.float32)
    h3 = jnp.maximum(h3 + b3_ref[...], 0.0)
    # Mask zero-padded output columns so they contribute 0 to the softmax.
    if valid_out_dim is not None:
        col = jax.lax.broadcasted_iota(jnp.int32, h3.shape, dimension=1)
        h3 = jnp.where(col < valid_out_dim, h3, -1e30)
    # Numerically stable softmax; reciprocal goes to the (otherwise idle) EUP.
    m = jnp.max(h3, axis=-1, keepdims=True)
    e = jnp.exp(h3 - m)
    denom = jnp.sum(e, axis=-1, keepdims=True)
    o_ref[...] = (e * pl.reciprocal(denom, approx=True)).astype(o_ref.dtype)


@functools.partial(jax.jit, static_argnames=("block_b", "single_buffer_params"))
def _mlp_forward_impl(x, w1, b1, w2, b2, w3, b3, *, block_b, single_buffer_params):
    B, in_dim = x.shape
    hid1 = w1.shape[1]
    hid2 = w2.shape[1]
    out_dim = w3.shape[1]

    # Pad every feature dim to the 128-lane granule: MXU passes are dense and
    # the output store is an unmasked, lane-dense vst.  Zero-padding weights /
    # biases / inputs preserves Linear+ReLU semantics exactly.
    d_in = _round_up(in_dim, _LANE)
    d1 = _round_up(hid1, _LANE)
    d2 = _round_up(hid2, _LANE)
    d_out = _round_up(out_dim, _LANE)

    # Batch tile: as large as the VMEM budget allows, multiple of 8 sublanes.
    # (For truly huge layers K-tiling of the weights would be needed instead.)
    param_bufs = 1 if single_buffer_params else 2
    b8 = _round_up(B, _SUBLANE)
    bb = max(_SUBLANE, _round_up(min(block_b, b8), _SUBLANE))
    while bb > _SUBLANE and _vmem_bytes(bb, d_in, d1, d2, d_out, param_bufs) > _VMEM_BUDGET_BYTES:
        bb = max(_SUBLANE, _round_up(bb // 2, _SUBLANE))
    # v7x has 2 TensorCores: keep >= 2 parallel grid steps when each half tile
    # still keeps the MXU reasonably full (>= 128 rows).
    if pl.cdiv(b8, bb) < 2 and b8 >= 2 * _LANE:
        bb = _round_up(pl.cdiv(b8, 2), _SUBLANE)

    b_pad = _round_up(b8, bb)
    grid = (b_pad // bb,)

    # bf16 matmul operands (halves weight bytes, native MXU dtype on all gens);
    # biases and all elementwise math stay f32.  In a real model these pads /
    # casts would be done once at parameter-init time, not per call.
    xp = _pad_to(x, (b_pad, d_in)).astype(jnp.bfloat16)
    w1p = _pad_to(w1, (d_in, d1)).astype(jnp.bfloat16)
    w2p = _pad_to(w2, (d1, d2)).astype(jnp.bfloat16)
    w3p = _pad_to(w3, (d2, d_out)).astype(jnp.bfloat16)
    b1p = _pad_to(b1, (1, d1)).astype(jnp.float32)
    b2p = _pad_to(b2, (1, d2)).astype(jnp.float32)
    b3p = _pad_to(b3, (1, d_out)).astype(jnp.float32)

    if single_buffer_params:
        def param_spec(shape):
            # Constant index_map -> same block every grid step; one pipeline
            # buffer avoids wasting VMEM on a useless double buffer.
            return pl.BlockSpec(shape, lambda i: (0, 0), pipeline_mode=pl.Buffered(1))
    else:
        def param_spec(shape):
            return pl.BlockSpec(shape, lambda i: (0, 0))

    kernel = functools.partial(
        mlp_kernel, valid_out_dim=out_dim if d_out != out_dim else None)

    out_padded = pl.pallas_call(
        kernel,
        out_shape=jax.ShapeDtypeStruct((b_pad, d_out), jnp.float32),
        grid_spec=pltpu.PrefetchScalarGridSpec(
            num_scalar_prefetch=0,
            grid=grid,
            in_specs=[
                pl.BlockSpec((bb, d_in), lambda i: (i, 0)),
                param_spec((d_in, d1)),
                param_spec((1, d1)),
                param_spec((d1, d2)),
                param_spec((1, d2)),
                param_spec((d2, d_out)),
                param_spec((1, d_out)),
            ],
            out_specs=pl.BlockSpec((bb, d_out), lambda i: (i, 0)),
        ),
        compiler_params=pltpu.CompilerParams(
            dimension_semantics=("parallel",),
            vmem_limit_bytes=_VMEM_LIMIT_BYTES,
        ),
    )(xp, w1p, b1p, w2p, b2p, w3p, b3p)

    # Strip batch padding and the lane padding of the softmax output.
    return out_padded[:B, :out_dim]


_SINGLE_BUFFER_OK = None


def mlp_forward(x, w1, b1, w2, b2, w3, b3, *, block_b=256):
    """Fused MLP forward. Tries single-buffered parameter blocks first."""
    global _SINGLE_BUFFER_OK
    if _SINGLE_BUFFER_OK is None:
        try:
            out = _mlp_forward_impl(x, w1, b1, w2, b2, w3, b3,
                                    block_b=block_b, single_buffer_params=True)
            _SINGLE_BUFFER_OK = True
            return out
        except Exception:
            # This jax version rejects pipeline_mode=pl.Buffered(1) on a
            # top-level BlockSpec; fall back to default double-buffered params
            # (identical results, slightly more VMEM).
            _SINGLE_BUFFER_OK = False
    return _mlp_forward_impl(x, w1, b1, w2, b2, w3, b3,
                             block_b=block_b,
                             single_buffer_params=_SINGLE_BUFFER_OK)


def init_params(key, in_dim, hid1, hid2, out_dim):
    """Deterministic parameter init (uniform, roughly PyTorch's default)."""
    ks = jax.random.split(key, 6)

    def lin(kw, kb, fan_in, fan_out):
        bound = 1.0 / jnp.sqrt(fan_in)
        w = jax.random.uniform(kw, (fan_in, fan_out), jnp.float32, -bound, bound)
        b = jax.random.uniform(kb, (1, fan_out), jnp.float32, -bound, bound)
        return w, b

    w1, b1 = lin(ks[0], ks[1], in_dim, hid1)
    w2, b2 = lin(ks[2], ks[3], hid1, hid2)
    w3, b3 = lin(ks[4], ks[5], hid2, out_dim)
    return w1, b1, w2, b2, w3, b3


def mlp_reference(x, w1, b1, w2, b2, w3, b3):
    h = jnp.maximum(x @ w1 + b1, 0.0)
    h = jnp.maximum(h @ w2 + b2, 0.0)
    h = jnp.maximum(h @ w3 + b3, 0.0)
    return jax.nn.softmax(h, axis=-1)


if __name__ == "__main__":
    # Small shapes consistent with the module's forward: x is (batch, in_dim).
    B, IN_DIM, HID1, HID2, OUT_DIM = 8, 32, 64, 32, 16

    key = jax.random.PRNGKey(0)
    kx, kx2, kp = jax.random.split(key, 3)
    x = jax.random.normal(kx, (B, IN_DIM), jnp.float32)
    params = init_params(kp, IN_DIM, HID1, HID2, OUT_DIM)

    out = jax.block_until_ready(mlp_forward(x, *params))
    ref = mlp_reference(x, *params)
    assert out.shape == (B, OUT_DIM)
    # bf16 matmul inputs -> loose tolerance vs the f32 reference.
    assert jnp.allclose(out, ref, atol=2e-2, rtol=2e-2), "mismatch vs reference"
    assert jnp.allclose(jnp.sum(out, axis=-1), 1.0, atol=1e-2)

    # Second config: batch not a multiple of the tile, >1 parallel grid step
    # (tail rows zero-padded in the wrapper, sliced away after the call).
    B2 = 200
    x2 = jax.random.normal(kx2, (B2, IN_DIM), jnp.float32)
    out2 = jax.block_until_ready(mlp_forward(x2, *params, block_b=128))
    ref2 = mlp_reference(x2, *params)
    assert out2.shape == (B2, OUT_DIM)
    assert jnp.allclose(out2, ref2, atol=2e-2, rtol=2e-2), "mismatch vs reference (B2)"
    assert jnp.allclose(jnp.sum(out2, axis=-1), 1.0, atol=1e-2)

    print("KERNEL_OK")
</pallas_src>

<mosaic_0001>
module attributes {stable_mosaic.version = 11 : i64} {
  func.func @mlp_kernel(%arg0: i32, %arg1: memref<8x128xbf16, #tpu.memory_space<vmem>>, %arg2: memref<128x128xbf16, #tpu.memory_space<vmem>>, %arg3: memref<1x128xf32, #tpu.memory_space<vmem>>, %arg4: memref<128x128xbf16, #tpu.memory_space<vmem>>, %arg5: memref<1x128xf32, #tpu.memory_space<vmem>>, %arg6: memref<128x128xbf16, #tpu.memory_space<vmem>>, %arg7: memref<1x128xf32, #tpu.memory_space<vmem>>, %arg8: memref<8x128xf32, #tpu.memory_space<vmem>>) attributes {dimension_semantics = [#tpu.dimension_semantics<parallel>], iteration_bounds = array<i64: 1>, scalar_prefetch = 0 : i64, scratch_operands = 0 : i64, tpu.core_type = #tpu.core_type<tc>, window_params = [{transform_indices = @transform_0, window_bounds = array<i64: 8, 128>}, {pipeline_mode = #tpu.pipeline_mode<synchronous>, transform_indices = @transform_1, window_bounds = array<i64: 128, 128>}, {pipeline_mode = #tpu.pipeline_mode<synchronous>, transform_indices = @transform_2, window_bounds = array<i64: 1, 128>}, {pipeline_mode = #tpu.pipeline_mode<synchronous>, transform_indices = @transform_3, window_bounds = array<i64: 128, 128>}, {pipeline_mode = #tpu.pipeline_mode<synchronous>, transform_indices = @transform_4, window_bounds = array<i64: 1, 128>}, {pipeline_mode = #tpu.pipeline_mode<synchronous>, transform_indices = @transform_5, window_bounds = array<i64: 128, 128>}, {pipeline_mode = #tpu.pipeline_mode<synchronous>, transform_indices = @transform_6, window_bounds = array<i64: 1, 128>}, {transform_indices = @transform_7, window_bounds = array<i64: 8, 128>}]} {
    %c0 = arith.constant 0 : index
    %c0_0 = arith.constant 0 : index
    %0 = vector.load %arg1[%c0, %c0_0] : memref<8x128xbf16, #tpu.memory_space<vmem>>, vector<8x128xbf16>
    %c0_1 = arith.constant 0 : index
    %c0_2 = arith.constant 0 : index
    %1 = vector.load %arg2[%c0_1, %c0_2] : memref<128x128xbf16, #tpu.memory_space<vmem>>, vector<128x128xbf16>
    %cst = arith.constant dense<0.000000e+00> : vector<8x128xf32>
    %2 = tpu.matmul %0, %1, %cst {dimension_numbers = #tpu.dot_dimension_numbers<[1], [0], [0], [1], [0, 0, 1, 1], [], []>} : vector<8x128xbf16>, vector<128x128xbf16>, vector<8x128xf32> -> vector<8x128xf32>
    %c0_3 = arith.constant 0 : index
    %c0_4 = arith.constant 0 : index
    %3 = vector.load %arg3[%c0_3, %c0_4] : memref<1x128xf32, #tpu.memory_space<vmem>>, vector<1x128xf32>
    %4 = vector.broadcast %3 : vector<1x128xf32> to vector<8x128xf32>
    %5 = arith.addf %2, %4 : vector<8x128xf32>
    %cst_5 = arith.constant 0.000000e+00 : f32
    %6 = vector.broadcast %cst_5 : f32 to vector<8x128xf32>
    %7 = arith.maximumf %5, %6 : vector<8x128xf32>
    %8 = arith.truncf %7 : vector<8x128xf32> to vector<8x128xbf16>
    %c0_6 = arith.constant 0 : index
    %c0_7 = arith.constant 0 : index
    %9 = vector.load %arg4[%c0_6, %c0_7] : memref<128x128xbf16, #tpu.memory_space<vmem>>, vector<128x128xbf16>
    %cst_8 = arith.constant dense<0.000000e+00> : vector<8x128xf32>
    %10 = tpu.matmul %8, %9, %cst_8 {dimension_numbers = #tpu.dot_dimension_numbers<[1], [0], [0], [1], [0, 0, 1, 1], [], []>} : vector<8x128xbf16>, vector<128x128xbf16>, vector<8x128xf32> -> vector<8x128xf32>
    %c0_9 = arith.constant 0 : index
    %c0_10 = arith.constant 0 : index
    %11 = vector.load %arg5[%c0_9, %c0_10] : memref<1x128xf32, #tpu.memory_space<vmem>>, vector<1x128xf32>
    %12 = vector.broadcast %11 : vector<1x128xf32> to vector<8x128xf32>
    %13 = arith.addf %10, %12 : vector<8x128xf32>
    %cst_11 = arith.constant 0.000000e+00 : f32
    %14 = vector.broadcast %cst_11 : f32 to vector<8x128xf32>
    %15 = arith.maximumf %13, %14 : vector<8x128xf32>
    %16 = arith.truncf %15 : vector<8x128xf32> to vector<8x128xbf16>
    %c0_12 = arith.constant 0 : index
    %c0_13 = arith.constant 0 : index
    %17 = vector.load %arg6[%c0_12, %c0_13] : memref<128x128xbf16, #tpu.memory_space<vmem>>, vector<128x128xbf16>
    %cst_14 = arith.constant dense<0.000000e+00> : vector<8x128xf32>
    %18 = tpu.matmul %16, %17, %cst_14 {dimension_numbers = #tpu.dot_dimension_numbers<[1], [0], [0], [1], [0, 0, 1, 1], [], []>} : vector<8x128xbf16>, vector<128x128xbf16>, vector<8x128xf32> -> vector<8x128xf32>
    %c0_15 = arith.constant 0 : index
    %c0_16 = arith.constant 0 : index
    %19 = vector.load %arg7[%c0_15, %c0_16] : memref<1x128xf32, #tpu.memory_space<vmem>>, vector<1x128xf32>
    %20 = vector.broadcast %19 : vector<1x128xf32> to vector<8x128xf32>
    %21 = arith.addf %18, %20 : vector<8x128xf32>
    %cst_17 = arith.constant 0.000000e+00 : f32
    %22 = vector.broadcast %cst_17 : f32 to vector<8x128xf32>
    %23 = arith.maximumf %21, %22 : vector<8x128xf32>
    %24 = tpu.iota {dimensions = array<i32: 1>} : vector<8x128xi32>
    %c16_i32 = arith.constant 16 : i32
    %25 = vector.broadcast %c16_i32 : i32 to vector<8x128xi32>
    %26 = arith.cmpi slt, %24, %25 : vector<8x128xi32>
    %cst_18 = arith.constant -1.000000e+30 : f32
    %27 = vector.broadcast %cst_18 : f32 to vector<8x128xf32>
    %28 = arith.select %26, %23, %27 : vector<8x128xi1>, vector<8x128xf32>
    %cst_19 = arith.constant dense<0xFF800000> : vector<8xf32>
    %29 = vector.multi_reduction <maximumf>, %28, %cst_19 [1] : vector<8x128xf32> to vector<8xf32>
    %30 = vector.shape_cast %29 : vector<8xf32> to vector<8x1xf32>
    %31 = vector.broadcast %30 : vector<8x1xf32> to vector<8x128xf32>
    %32 = arith.subf %28, %31 : vector<8x128xf32>
    %33 = math.exp %32 : vector<8x128xf32>
    %cst_20 = arith.constant dense<0.000000e+00> : vector<8xf32>
    %34 = vector.multi_reduction <add>, %33, %cst_20 [1] : vector<8x128xf32> to vector<8xf32>
    %35 = vector.shape_cast %34 : vector<8xf32> to vector<8x1xf32>
    %36 = tpu.reciprocal %35 {approx = true} : vector<8x1xf32> -> vector<8x1xf32>
    %37 = vector.broadcast %36 : vector<8x1xf32> to vector<8x128xf32>
    %38 = arith.mulf %33, %37 : vector<8x128xf32>
    %c0_21 = arith.constant 0 : index
    %c0_22 = arith.constant 0 : index
    %39 = vector.load %arg8[%c0_21, %c0_22] : memref<8x128xf32, #tpu.memory_space<vmem>>, vector<8x128xf32>
    tpu.vector_store %arg8[%c0_21, %c0_22], %38 {strides = array<i32>} : memref<8x128xf32, #tpu.memory_space<vmem>>, vector<8x128xf32>,
    return
  }
  func.func @transform_0(%arg0: i32) -> (i32, i32) {
    %c0_i32 = arith.constant 0 : i32
    %c0_i32_0 = arith.constant 0 : i32
    return %arg0, %c0_i32 : i32, i32
  }
  func.func @transform_1(%arg0: i32) -> (i32, i32) {
    %c0_i32 = arith.constant 0 : i32
    %c0_i32_0 = arith.constant 0 : i32
    %c0_i32_1 = arith.constant 0 : i32
    return %c0_i32, %c0_i32_0 : i32, i32
  }
  func.func @transform_2(%arg0: i32) -> (i32, i32) {
    %c0_i32 = arith.constant 0 : i32
    %c0_i32_0 = arith.constant 0 : i32
    %c0_i32_1 = arith.constant 0 : i32
    return %c0_i32, %c0_i32_0 : i32, i32
  }
  func.func @transform_3(%arg0: i32) -> (i32, i32) {
    %c0_i32 = arith.constant 0 : i32
    %c0_i32_0 = arith.constant 0 : i32
    %c0_i32_1 = arith.constant 0 : i32
    return %c0_i32, %c0_i32_0 : i32, i32
  }
  func.func @transform_4(%arg0: i32) -> (i32, i32) {
    %c0_i32 = arith.constant 0 : i32
    %c0_i32_0 = arith.constant 0 : i32
    %c0_i32_1 = arith.constant 0 : i32
    return %c0_i32, %c0_i32_0 : i32, i32
  }
  func.func @transform_5(%arg0: i32) -> (i32, i32) {
    %c0_i32 = arith.constant 0 : i32
    %c0_i32_0 = arith.constant 0 : i32
    %c0_i32_1 = arith.constant 0 : i32
    return %c0_i32, %c0_i32_0 : i32, i32
  }
  func.func @transform_6(%arg0: i32) -> (i32, i32) {
    %c0_i32 = arith.constant 0 : i32
    %c0_i32_0 = arith.constant 0 : i32
    %c0_i32_1 = arith.constant 0 : i32
    return %c0_i32, %c0_i32_0 : i32, i32
  }
  func.func @transform_7(%arg0: i32) -> (i32, i32) {
    %c0_i32 = arith.constant 0 : i32
    %c0_i32_0 = arith.constant 0 : i32
    return %arg0, %c0_i32 : i32, i32
  }
}

module attributes {stable_mosaic.version = 11 : i64} {
  func.func @mlp_kernel(%arg0: i32, %arg1: memref<8x128xbf16, #tpu.memory_space<vmem>>, %arg2: memref<128x128xbf16, #tpu.memory_space<vmem>>, %arg3: memref<1x128xf32, #tpu.memory_space<vmem>>, %arg4: memref<128x128xbf16, #tpu.memory_space<vmem>>, %arg5: memref<1x128xf32, #tpu.memory_space<vmem>>, %arg6: memref<128x128xbf16, #tpu.memory_space<vmem>>, %arg7: memref<1x128xf32, #tpu.memory_space<vmem>>, %arg8: memref<8x128xf32, #tpu.memory_space<vmem>>) attributes {dimension_semantics = [#tpu.dimension_semantics<parallel>], iteration_bounds = array<i64: 1>, scalar_prefetch = 0 : i64, scratch_operands = 0 : i64, tpu.core_type = #tpu.core_type<tc>, window_params = [{transform_indices = @transform_0, window_bounds = array<i64: 8, 128>}, {pipeline_mode = #tpu.pipeline_mode<synchronous>, transform_indices = @transform_1, window_bounds = array<i64: 128, 128>}, {pipeline_mode = #tpu.pipeline_mode<synchronous>, transform_indices = @transform_2, window_bounds = array<i64: 1, 128>}, {pipeline_mode = #tpu.pipeline_mode<synchronous>, transform_indices = @transform_3, window_bounds = array<i64: 128, 128>}, {pipeline_mode = #tpu.pipeline_mode<synchronous>, transform_indices = @transform_4, window_bounds = array<i64: 1, 128>}, {pipeline_mode = #tpu.pipeline_mode<synchronous>, transform_indices = @transform_5, window_bounds = array<i64: 128, 128>}, {pipeline_mode = #tpu.pipeline_mode<synchronous>, transform_indices = @transform_6, window_bounds = array<i64: 1, 128>}, {transform_indices = @transform_7, window_bounds = array<i64: 8, 128>}]} {
    %c0 = arith.constant 0 : index
    %c0_0 = arith.constant 0 : index
    %0 = vector.load %arg1[%c0, %c0_0] : memref<8x128xbf16, #tpu.memory_space<vmem>>, vector<8x128xbf16>
    %c0_1 = arith.constant 0 : index
    %c0_2 = arith.constant 0 : index
    %1 = vector.load %arg2[%c0_1, %c0_2] : memref<128x128xbf16, #tpu.memory_space<vmem>>, vector<128x128xbf16>
    %cst = arith.constant dense<0.000000e+00> : vector<8x128xf32>
    %2 = tpu.matmul %0, %1, %cst {dimension_numbers = #tpu.dot_dimension_numbers<[1], [0], [0], [1], [0, 0, 1, 1], [], []>} : vector<8x128xbf16>, vector<128x128xbf16>, vector<8x128xf32> -> vector<8x128xf32>
    %c0_3 = arith.constant 0 : index
    %c0_4 = arith.constant 0 : index
    %3 = vector.load %arg3[%c0_3, %c0_4] : memref<1x128xf32, #tpu.memory_space<vmem>>, vector<1x128xf32>
    %4 = vector.broadcast %3 : vector<1x128xf32> to vector<8x128xf32>
    %5 = arith.addf %2, %4 : vector<8x128xf32>
    %cst_5 = arith.constant 0.000000e+00 : f32
    %6 = vector.broadcast %cst_5 : f32 to vector<8x128xf32>
    %7 = arith.maximumf %5, %6 : vector<8x128xf32>
    %8 = arith.truncf %7 : vector<8x128xf32> to vector<8x128xbf16>
    %c0_6 = arith.constant 0 : index
    %c0_7 = arith.constant 0 : index
    %9 = vector.load %arg4[%c0_6, %c0_7] : memref<128x128xbf16, #tpu.memory_space<vmem>>, vector<128x128xbf16>
    %cst_8 = arith.constant dense<0.000000e+00> : vector<8x128xf32>
    %10 = tpu.matmul %8, %9, %cst_8 {dimension_numbers = #tpu.dot_dimension_numbers<[1], [0], [0], [1], [0, 0, 1, 1], [], []>} : vector<8x128xbf16>, vector<128x128xbf16>, vector<8x128xf32> -> vector<8x128xf32>
    %c0_9 = arith.constant 0 : index
    %c0_10 = arith.constant 0 : index
    %11 = vector.load %arg5[%c0_9, %c0_10] : memref<1x128xf32, #tpu.memory_space<vmem>>, vector<1x128xf32>
    %12 = vector.broadcast %11 : vector<1x128xf32> to vector<8x128xf32>
    %13 = arith.addf %10, %12 : vector<8x128xf32>
    %cst_11 = arith.constant 0.000000e+00 : f32
    %14 = vector.broadcast %cst_11 : f32 to vector<8x128xf32>
    %15 = arith.maximumf %13, %14 : vector<8x128xf32>
    %16 = arith.truncf %15 : vector<8x128xf32> to vector<8x128xbf16>
    %c0_12 = arith.constant 0 : index
    %c0_13 = arith.constant 0 : index
    %17 = vector.load %arg6[%c0_12, %c0_13] : memref<128x128xbf16, #tpu.memory_space<vmem>>, vector<128x128xbf16>
    %cst_14 = arith.constant dense<0.000000e+00> : vector<8x128xf32>
    %18 = tpu.matmul %16, %17, %cst_14 {dimension_numbers = #tpu.dot_dimension_numbers<[1], [0], [0], [1], [0, 0, 1, 1], [], []>} : vector<8x128xbf16>, vector<128x128xbf16>, vector<8x128xf32> -> vector<8x128xf32>
    %c0_15 = arith.constant 0 : index
    %c0_16 = arith.constant 0 : index
    %19 = vector.load %arg7[%c0_15, %c0_16] : memref<1x128xf32, #tpu.memory_space<vmem>>, vector<1x128xf32>
    %20 = vector.broadcast %19 : vector<1x128xf32> to vector<8x128xf32>
    %21 = arith.addf %18, %20 : vector<8x128xf32>
    %cst_17 = arith.constant 0.000000e+00 : f32
    %22 = vector.broadcast %cst_17 : f32 to vector<8x128xf32>
    %23 = arith.maximumf %21, %22 : vector<8x128xf32>
    %24 = tpu.iota {dimensions = array<i32: 1>} : vector<8x128xi32>
    %c16_i32 = arith.constant 16 : i32
    %25 = vector.broadcast %c16_i32 : i32 to vector<8x128xi32>
    %26 = arith.cmpi slt, %24, %25 : vector<8x128xi32>
    %cst_18 = arith.constant -1.000000e+30 : f32
    %27 = vector.broadcast %cst_18 : f32 to vector<8x128xf32>
    %28 = arith.select %26, %23, %27 : vector<8x128xi1>, vector<8x128xf32>
    %cst_19 = arith.constant dense<0xFF800000> : vector<8xf32>
    %29 = vector.multi_reduction <maximumf>, %28, %cst_19 [1] : vector<8x128xf32> to vector<8xf32>
    %30 = vector.shape_cast %29 : vector<8xf32> to vector<8x1xf32>
    %31 = vector.broadcast %30 : vector<8x1xf32> to vector<8x128xf32>
    %32 = arith.subf %28, %31 : vector<8x128xf32>
    %33 = math.exp %32 : vector<8x128xf32>
    %cst_20 = arith.constant dense<0.000000e+00> : vector<8xf32>
    %34 = vector.multi_reduction <add>, %33, %cst_20 [1] : vector<8x128xf32> to vector<8xf32>
    %35 = vector.shape_cast %34 : vector<8xf32> to vector<8x1xf32>
    %36 = tpu.reciprocal %35 {approx = true} : vector<8x1xf32> -> vector<8x1xf32>
    %37 = vector.broadcast %36 : vector<8x1xf32> to vector<8x128xf32>
    %38 = arith.mulf %33, %37 : vector<8x128xf32>
    %c0_21 = arith.constant 0 : index
    %c0_22 = arith.constant 0 : index
    %39 = vector.load %arg8[%c0_21, %c0_22] : memref<8x128xf32, #tpu.memory_space<vmem>>, vector<8x128xf32>
    tpu.vector_store %arg8[%c0_21, %c0_22], %38 {strides = array<i32>} : memref<8x128xf32, #tpu.memory_space<vmem>>, vector<8x128xf32>,
    return
  }
  func.func @transform_0(%arg0: i32) -> (i32, i32) {
    %c0_i32 = arith.constant 0 : i32
    %c0_i32_0 = arith.constant 0 : i32
    return %arg0, %c0_i32 : i32, i32
  }
  func.func @transform_1(%arg0: i32) -> (i32, i32) {
    %c0_i32 = arith.constant 0 : i32
    %c0_i32_0 = arith.constant 0 : i32
    %c0_i32_1 = arith.constant 0 : i32
    return %c0_i32, %c0_i32_0 : i32, i32
  }
  func.func @transform_2(%arg0: i32) -> (i32, i32) {
    %c0_i32 = arith.constant 0 : i32
    %c0_i32_0 = arith.constant 0 : i32
    %c0_i32_1 = arith.constant 0 : i32
    return %c0_i32, %c0_i32_0 : i32, i32
  }
  func.func @transform_3(%arg0: i32) -> (i32, i32) {
    %c0_i32 = arith.constant 0 : i32
    %c0_i32_0 = arith.constant 0 : i32
    %c0_i32_1 = arith.constant 0 : i32
    return %c0_i32, %c0_i32_0 : i32, i32
  }
  func.func @transform_4(%arg0: i32) -> (i32, i32) {
    %c0_i32 = arith.constant 0 : i32
    %c0_i32_0 = arith.constant 0 : i32
    %c0_i32_1 = arith.constant 0 : i32
    return %c0_i32, %c0_i32_0 : i32, i32
  }
  func.func @transform_5(%arg0: i32) -> (i32, i32) {
    %c0_i32 = arith.constant 0 : i32
    %c0_i32_0 = arith.constant 0 : i32
    %c0_i32_1 = arith.constant 0 : i32
    return %c0_i32, %c0_i32_0 : i32, i32
  }
  func.func @transform_6(%arg0: i32) -> (i32, i32) {
    %c0_i32 = arith.constant 0 : i32
    %c0_i32_0 = arith.constant 0 : i32
    %c0_i32_1 = arith.constant 0 : i32
    return %c0_i32, %c0_i32_0 : i32, i32
  }
  func.func @transform_7(%arg0: i32) -> (i32, i32) {
    %c0_i32 = arith.constant 0 : i32
    %c0_i32_0 = arith.constant 0 : i32
    return %arg0, %c0_i32 : i32, i32
  }
}

</mosaic_0001>

<bundles_post_ra>
// kernel: _mlp_forward_impl.1
= control target key start
LH: loop header
LB: loop body
LE: loop exit
PB: predicated region body
PF: predicated region fallthrough
CT: control target
= control target key end

     0   :  { %12 = vsyncpa [#allocation3], 0  ;;  %s1013_s0 = inlined_call_operand.hbm [shape: bf16[8,128], index: 0, kind: input, shape index: {}]   ;;  %s1014_s1 = inlined_call_operand.hbm [shape: bf16[128,128], index: 1, kind: input, shape index: {}]   ;;  %s1015_s2 = inlined_call_operand.hbm [shape: f32[1,128], index: 2, kind: input, shape index: {}]   ;;  %s1016_s3 = inlined_call_operand.hbm [shape: bf16[128,128], index: 3, kind: input, shape index: {}]   ;;  %s1017_s4 = inlined_call_operand.hbm [shape: f32[1,128], index: 4, kind: input, shape index: {}]   ;;  %s1018_s5 = inlined_call_operand.hbm [shape: bf16[128,128], index: 5, kind: input, shape index: {}]   ;;  %s1019_s6 = inlined_call_operand.hbm [shape: f32[1,128], index: 6, kind: input, shape index: {}]   ;;  %s1020_s7 = inlined_call_operand.hbm [shape: f32[8,128], index: 7, kind: output, shape index: {}]  }
   0x1   :  { %13 = vsyncpa [#allocation6], 0 }
   0x2   :  { %14 = vsyncpa [#allocation9], 0 }
   0x3   :  { %15 = vsyncpa [#allocation12], 0 }
   0x4   :  { %16 = vsyncpa [#allocation4], 0  ;;  %s826_s24 = smov [#allocation5]   ;;  %s640_s28 = scalar_lea.hbm %s1014_s1, 1024 }
   0x5   :  { %s32_s25 = sshll.u32 %s826_s24, 4  ;;  %p641_p0 = scmp.ne.s32.totalorder %s1014_s1, %s640_s28  ;;  %s33_s25 = int_to_ptr.vmem [resolvable:$true] %s32_s25 }
   0x6   :  { %p644_p1 = scmp.lt.u32.totalorder %s640_s28, %s1014_s1 }
   0x8   :  { %p646_p2 = pnand %p644_p1, %p641_p0 }
   0xa   :  { %649 = shalt.err (!%p646_p2)
}
   0xb   :  { %s650_s10 = scalar_lea.vmem %s33_s25, 1024  ;;  %p655_p4 = scmp.lt.s32.totalorder %s33_s25, %s33_s25 }
   0xc   :  { %p651_p3 = scmp.ne.s32.totalorder %s33_s25, %s650_s10  ;;  %p656_p5 = scmp.lt.s32.totalorder %s650_s10, %s650_s10 }
   0xe   :  { %p657_p6 = por %p656_p5, %p655_p4 }
  0x10   :  { %p658_p7 = pnand %p657_p6, %p651_p3 }
  0x12   :  { %661 = shalt.err (!%p658_p7)
}
  0x13   :  { %s827_s11 = smov 64   ;;  %s828_s12 = smov 4  }
  0x14   :  { %38 = dma.hbm_to_vmem [thread:$0]  %s1014_s1, 1024, %s33_s25, [#allocation6], %s827_s11, %s827_s11, %s828_s12  }
  0x15   :  { %s829_s15 = smov [#allocation8]   ;;  %s830_s17 = smov [#allocation11]  }
  0x16   :  { %s54_s16 = sshll.u32 %s829_s15, 4  ;;  %s76_s18 = sshll.u32 %s830_s17, 4  ;;  %s55_s16 = int_to_ptr.vmem [resolvable:$true] %s54_s16  ;;  %s77_s18 = int_to_ptr.vmem [resolvable:$true] %s76_s18 }
  0x17   :  { %s662_s21 = scalar_lea.hbm %s1016_s3, 1024 }
  0x18   :  { %p663_p8 = scmp.ne.s32.totalorder %s1016_s3, %s662_s21  ;;  %p666_p9 = scmp.lt.u32.totalorder %s662_s21, %s1016_s3 }
  0x1a   :  { %p668_p10 = pnand %p666_p9, %p663_p8 }
  0x1c   :  { %671 = shalt.err (!%p668_p10)
}
  0x1d   :  { %s672_s1 = scalar_lea.vmem %s55_s16, 1024  ;;  %p677_p12 = scmp.lt.s32.totalorder %s55_s16, %s55_s16 }
  0x1e   :  { %p673_p11 = scmp.ne.s32.totalorder %s55_s16, %s672_s1  ;;  %p678_p13 = scmp.lt.s32.totalorder %s672_s1, %s672_s1 }
  0x20   :  { %p679_p0 = por %p678_p13, %p677_p12 }
  0x22   :  { %p680_p1 = pnand %p679_p0, %p673_p11 }
  0x24   :  { %683 = shalt.err (!%p680_p1)
}
  0x25   :  { %60 = dma.hbm_to_vmem [thread:$0]  %s1016_s3, 1024, %s55_s16, [#allocation9], %s827_s11, %s827_s11, %s828_s12  }
  0x26   :  { %s684_s30 = scalar_lea.hbm %s1018_s5, 1024 }
  0x27   :  { %p685_p2 = scmp.ne.s32.totalorder %s1018_s5, %s684_s30  ;;  %p688_p3 = scmp.lt.u32.totalorder %s684_s30, %s1018_s5 }
  0x29   :  { %p690_p4 = pnand %p688_p3, %p685_p2 }
  0x2b   :  { %693 = shalt.err (!%p690_p4)
}
  0x2c   :  { %s694_s14 = scalar_lea.vmem %s77_s18, 1024  ;;  %p699_p6 = scmp.lt.s32.totalorder %s77_s18, %s77_s18 }
  0x2d   :  { %p695_p5 = scmp.ne.s32.totalorder %s77_s18, %s694_s14  ;;  %p700_p7 = scmp.lt.s32.totalorder %s694_s14, %s694_s14 }
  0x2f   :  { %p701_p8 = por %p700_p7, %p699_p6 }
  0x31   :  { %p702_p9 = pnand %p701_p8, %p695_p5 }
  0x33   :  { %705 = shalt.err (!%p702_p9)
}
  0x34   :  { %82 = dma.hbm_to_vmem [thread:$0]  %s1018_s5, 1024, %s77_s18, [#allocation12], %s827_s11, %s827_s11, %s828_s12  }
  0x35   :  { %s831_s16 = smov [#allocation2]   ;;  %s832_s19 = smov [#allocation7]  }
  0x36   :  { %s23_s17 = sshll.u32 %s831_s16, 4  ;;  %s45_s20 = sshll.u32 %s832_s19, 4  ;;  %s24_s17 = int_to_ptr.vmem [resolvable:$true] %s23_s17  ;;  %s46_s20 = int_to_ptr.vmem [resolvable:$true] %s45_s20 }
  0x37   :  { %s706_s23 = scalar_lea.hbm %s1013_s0, 64 }
  0x38   :  { %p707_p10 = scmp.ne.s32.totalorder %s1013_s0, %s706_s23  ;;  %p710_p11 = scmp.lt.u32.totalorder %s706_s23, %s1013_s0 }
  0x3a   :  { %p712_p12 = pnand %p710_p11, %p707_p10 }
  0x3c   :  { %715 = shalt.err (!%p712_p12)
}
  0x3d   :  { %s716_s5 = scalar_lea.vmem %s24_s17, 64  ;;  %p721_p0 = scmp.lt.s32.totalorder %s24_s17, %s24_s17 }
  0x3e   :  { %p717_p13 = scmp.ne.s32.totalorder %s24_s17, %s716_s5  ;;  %p722_p1 = scmp.lt.s32.totalorder %s716_s5, %s716_s5 }
  0x40   :  { %p723_p2 = por %p722_p1, %p721_p0 }
  0x42   :  { %p724_p3 = pnand %p723_p2, %p717_p13 }
  0x44   :  { %727 = shalt.err (!%p724_p3)
}
  0x45   :  { %26 = dma.hbm_to_vmem [thread:$0]  %s1013_s0, 64, %s24_s17, [#allocation3]  }
  0x46   :  { %s728_s28 = scalar_lea.hbm %s1015_s2, 16 }
  0x47   :  { %p729_p4 = scmp.ne.s32.totalorder %s1015_s2, %s728_s28  ;;  %p732_p5 = scmp.lt.u32.totalorder %s728_s28, %s1015_s2 }
  0x49   :  { %p734_p6 = pnand %p732_p5, %p729_p4 }
  0x4b   :  { %737 = shalt.err (!%p734_p6)
}
  0x4c   :  { %s738_s10 = scalar_lea.vmem %s46_s20, 16  ;;  %s742_s13 = scalar_lea.vmem %s46_s20, 32 }
  0x4d   :  { %p739_p7 = scmp.ne.s32.totalorder %s46_s20, %s738_s10  ;;  %p743_p8 = scmp.lt.s32.totalorder %s46_s20, %s46_s20 }
  0x4e   :  { %p744_p9 = scmp.lt.s32.totalorder %s742_s13, %s738_s10 }
  0x50   :  { %p745_p10 = por %p744_p9, %p743_p8 }
  0x52   :  { %p746_p11 = pnand %p745_p10, %p739_p7 }
  0x54   :  { %749 = shalt.err (!%p746_p11)
}
  0x55   :  { %48 = dma.hbm_to_vmem [thread:$0]  %s1015_s2, 16, %s46_s20, [#allocation6]  }
  0x56   :  { %s833_s3 = smov [#allocation10]   ;;  %s834_s16 = smov [#allocation13]  }
  0x57   :  { %s67_s15 = sshll.u32 %s833_s3, 4  ;;  %s89_s17 = sshll.u32 %s834_s16, 4  ;;  %s68_s15 = int_to_ptr.vmem [resolvable:$true] %s67_s15  ;;  %s90_s17 = int_to_ptr.vmem [resolvable:$true] %s89_s17 }
  0x58   :  { %s750_s22 = scalar_lea.hbm %s1017_s4, 16 }
  0x59   :  { %p751_p12 = scmp.ne.s32.totalorder %s1017_s4, %s750_s22  ;;  %p754_p13 = scmp.lt.u32.totalorder %s750_s22, %s1017_s4 }
  0x5b   :  { %p756_p0 = pnand %p754_p13, %p751_p12 }
  0x5d   :  { %759 = shalt.err (!%p756_p0)
}
  0x5e   :  { %s760_s2 = scalar_lea.vmem %s68_s15, 16  ;;  %s764_s20 = scalar_lea.vmem %s68_s15, 32 }
  0x5f   :  { %p761_p1 = scmp.ne.s32.totalorder %s68_s15, %s760_s2  ;;  %p765_p2 = scmp.lt.s32.totalorder %s68_s15, %s68_s15 }
  0x60   :  { %p766_p3 = scmp.lt.s32.totalorder %s764_s20, %s760_s2 }
  0x62   :  { %p767_p4 = por %p766_p3, %p765_p2 }
  0x64   :  { %p768_p5 = pnand %p767_p4, %p761_p1 }
  0x66   :  { %771 = shalt.err (!%p768_p5)
}
  0x67   :  { %70 = dma.hbm_to_vmem [thread:$0]  %s1017_s4, 16, %s68_s15, [#allocation9]  }
  0x68   :  { %s772_s18 = scalar_lea.hbm %s1019_s6, 16 }
  0x69   :  { %p773_p6 = scmp.ne.s32.totalorder %s1019_s6, %s772_s18  ;;  %p776_p7 = scmp.lt.u32.totalorder %s772_s18, %s1019_s6 }
  0x6b   :  { %p778_p8 = pnand %p776_p7, %p773_p6 }
  0x6d   :  { %781 = shalt.err (!%p778_p8)
}
  0x6e   :  { %s782_s8 = scalar_lea.vmem %s90_s17, 16  ;;  %s786_s9 = scalar_lea.vmem %s90_s17, 32 }
  0x6f   :  { %p783_p9 = scmp.ne.s32.totalorder %s90_s17, %s782_s8  ;;  %p787_p10 = scmp.lt.s32.totalorder %s90_s17, %s90_s17 }
  0x70   :  { %p788_p11 = scmp.lt.s32.totalorder %s786_s9, %s782_s8 }
  0x72   :  { %p789_p12 = por %p788_p11, %p787_p10 }
  0x74   :  { %p790_p13 = pnand %p789_p12, %p783_p9 }
  0x76   :  { %793 = shalt.err (!%p790_p13)
}
  0x77   :  { %92 = dma.hbm_to_vmem [thread:$0]  %s1019_s6, 16, %s90_s17, [#allocation12]  }
  0x78   :  { %816 = dma.done.wait [#allocation3], 64  }
  0x79   :  { %817 = vsyncadd [#allocation3], 4294967232 }
  0x7a   :  { %818 = dma.done.wait [#allocation6], 1040  }
  0x7b   :  { %819 = vsyncadd [#allocation6], 4294966256 }
  0x7c   :  { %820 = dma.done.wait [#allocation9], 1040  }
  0x7d   :  { %821 = vsyncadd [#allocation9], 4294966256 }
  0x7e   :  { %822 = dma.done.wait [#allocation12], 1040  }
  0x7f   :  { %823 = vsyncadd [#allocation12], 4294966256  ;;  %v835_v0 = vmov 0.0   ;;  %vm836_vm0 = vmmov 0   ;;  %v612_v1 = vld [vmem:[#allocation5] sm:$0xff]   ;;  %v613_v2 = vld [vmem:[#allocation5 + $0x8] sm:$0xff]   ;;  %v454_v42 = vlaneseq }
  0x80   :  { %540 = vmatprep.subr.bf16.mxu0 %v835_v0  ;;  %556 = vmatprep.mubr.msk.bf16.mxu0 %vm836_vm0, %v835_v0  ;;  %v614_v3 = vld [vmem:[#allocation5 + $0x10] sm:$0xff]   ;;  %v620_v4 = vld [vmem:[#allocation8] sm:$0xff]   ;;  %v615_v5 = vld [vmem:[#allocation5 + $0x18] sm:$0xff]   ;;  %s837_s6 = smov [#allocation14]  }
  0x81   :  { %560 = vmatprep.subr.bf16.mxu1 %v835_v0  ;;  %576 = vmatprep.mubr.msk.bf16.mxu1 %vm836_vm0, %v835_v0  ;;  %v621_v6 = vld [vmem:[#allocation8 + $0x8] sm:$0xff]   ;;  %v616_v7 = vld [vmem:[#allocation5 + $0x20] sm:$0xff]   ;;  %v622_v8 = vld [vmem:[#allocation8 + $0x10] sm:$0xff]   ;;  %v455_v44 = vand.u32 127, %v454_v42  ;;  %s474_s13 = sshll.u32 %s837_s6, 4  ;;  %s475_s13 = int_to_ptr.vmem [resolvable:$true] %s474_s13 }
  0x82   :  { %541 = vmatpush3.bf16.msra.mxu0 %v612_v1  ;;  %561 = vmatpush3.bf16.msra.mxu1 %v620_v4  ;;  %v617_v9 = vld [vmem:[#allocation5 + $0x28] sm:$0xff]   ;;  %v623_v10 = vld [vmem:[#allocation8 + $0x18] sm:$0xff]   ;;  %v618_v11 = vld [vmem:[#allocation5 + $0x30] sm:$0xff]   ;;  %s794_s0 = scalar_lea.vmem %s475_s13, 128  ;;  %p799_p1 = scmp.lt.s32.totalorder %s475_s13, %s475_s13 }
  0x83   :  { %542 = vmatprep.subr.bf16.mxu0 %v835_v0  ;;  %562 = vmatprep.subr.bf16.mxu1 %v835_v0  ;;  %v624_v12 = vld [vmem:[#allocation8 + $0x20] sm:$0xff]   ;;  %v619_v13 = vld [vmem:[#allocation5 + $0x38] sm:$0xff]   ;;  %v625_v14 = vld [vmem:[#allocation8 + $0x28] sm:$0xff]   ;;  %vm456_vm1 = vcmp.lt.s32.totalorder %v455_v44, 16  ;;  %p795_p0 = scmp.ne.s32.totalorder %s475_s13, %s794_s0  ;;  %p800_p2 = scmp.lt.s32.totalorder %s794_s0, %s794_s0 }
  0x84   :  { %v115_v15 = vld [vmem:[#allocation2] sm:$0xf]  ;;  %v626_v16 = vld [vmem:[#allocation8 + $0x30] sm:$0xff]   ;;  %v628_v18 = vld [vmem:[#allocation11] sm:$0xff]  }
  0x85   :  { %v627_v17 = vld [vmem:[#allocation8 + $0x38] sm:$0xff]   ;;  %v629_v19 = vld [vmem:[#allocation11 + $0x8] sm:$0xff]   ;;  %v632_v22 = vld [vmem:[#allocation11 + $0x20] sm:$0xff]   ;;  %p801_p3 = por %p800_p2, %p799_p1 }
  0x86   :  { %543 = vmatpush3.bf16.msra.mxu0 %v613_v2  ;;  %563 = vmatpush3.bf16.msra.mxu1 %v621_v6  ;;  %v630_v20 = vld [vmem:[#allocation11 + $0x10] sm:$0xff]   ;;  %v631_v21 = vld [vmem:[#allocation11 + $0x18] sm:$0xff]   ;;  %v633_v23 = vld [vmem:[#allocation11 + $0x28] sm:$0xff]  }
  0x87   :  { %544 = vmatprep.subr.bf16.mxu0 %v835_v0  ;;  %564 = vmatprep.subr.bf16.mxu1 %v835_v0  ;;  %v486_v24 = vld [vmem:[#allocation7] ss:$0 sm:$0xff]  ;;  %v634_v32 = vld [vmem:[#allocation11 + $0x30] sm:$0xff]   ;;  %v495_v34 = vld [vmem:[#allocation10] ss:$0 sm:$0xff]  ;;  %p802_p4 = pnand %p801_p3, %p795_p0 }
  0x88   :  { %v635_v33 = vld [vmem:[#allocation11 + $0x38] sm:$0xff]   ;;  %v504_v43 = vld [vmem:[#allocation13] ss:$0 sm:$0xff] }
  0x8a   :  { %545 = vmatpush3.bf16.msra.mxu0 %v614_v3  ;;  %565 = vmatpush3.bf16.msra.mxu1 %v622_v8 }
  0x8b   :  { %546 = vmatprep.subr.bf16.mxu0 %v835_v0  ;;  %566 = vmatprep.subr.bf16.mxu1 %v835_v0 }
  0x8e   :  { %547 = vmatpush3.bf16.msra.mxu0 %v615_v5  ;;  %567 = vmatpush3.bf16.msra.mxu1 %v623_v10 }
  0x8f   :  { %548 = vmatprep.subr.bf16.mxu0 %v835_v0  ;;  %568 = vmatprep.subr.bf16.mxu1 %v835_v0 }
  0x92   :  { %549 = vmatpush3.bf16.msra.mxu0 %v616_v7  ;;  %569 = vmatpush3.bf16.msra.mxu1 %v624_v12 }
  0x93   :  { %550 = vmatprep.subr.bf16.mxu0 %v835_v0  ;;  %570 = vmatprep.subr.bf16.mxu1 %v835_v0 }
  0x96   :  { %551 = vmatpush3.bf16.msra.mxu0 %v617_v9  ;;  %571 = vmatpush3.bf16.msra.mxu1 %v625_v14 }
  0x97   :  { %552 = vmatprep.subr.bf16.mxu0 %v835_v0  ;;  %572 = vmatprep.subr.bf16.mxu1 %v835_v0 }
  0x9a   :  { %553 = vmatpush3.bf16.msra.mxu0 %v618_v11  ;;  %573 = vmatpush3.bf16.msra.mxu1 %v626_v16 }
  0x9b   :  { %554 = vmatprep.subr.bf16.mxu0 %v835_v0  ;;  %574 = vmatprep.subr.bf16.mxu1 %v835_v0 }
  0x9e   :  { %555 = vmatpush3.bf16.msra.mxu0 %v619_v13  ;;  %575 = vmatpush3.bf16.msra.mxu1 %v627_v17 }
  0x9f   :  { %580 = vmatprep.subr.bf16.mxu0 %v835_v0 }
  0xa1   :  { %557 = vmatmul.mubr.bf16.vlgmr.msra.gmra.mrb[0].mxu0 %v115_v15 }
  0xa2   :  { %596 = vmatprep.mubr.msk.bf16.mxu0 %vm836_vm0, %v835_v0  ;;  %581 = vmatpush3.bf16.msra.mxu0 %v628_v18 }
  0xa3   :  { %582 = vmatprep.subr.bf16.mxu0 %v835_v0 }
  0xa6   :  { %583 = vmatpush3.bf16.msra.mxu0 %v629_v19 }
  0xa7   :  { %584 = vmatprep.subr.bf16.mxu0 %v835_v0 }
  0xaa   :  { %585 = vmatpush3.bf16.msra.mxu0 %v630_v20 }
  0xab   :  { %586 = vmatprep.subr.bf16.mxu0 %v835_v0 }
  0xae   :  { %587 = vmatpush3.bf16.msra.mxu0 %v631_v21 }
  0xaf   :  { %588 = vmatprep.subr.bf16.mxu0 %v835_v0 }
  0xb2   :  { %589 = vmatpush3.bf16.msra.mxu0 %v632_v22 }
  0xb3   :  { %590 = vmatprep.subr.bf16.mxu0 %v835_v0 }
  0xb6   :  { %591 = vmatpush3.bf16.msra.mxu0 %v633_v23 }
  0xb7   :  { %592 = vmatprep.subr.bf16.mxu0 %v835_v0 }
  0xba   :  { %593 = vmatpush3.bf16.msra.mxu0 %v634_v32 }
  0xbb   :  { %594 = vmatprep.subr.bf16.mxu0 %v835_v0 }
  0xbe   :  { %595 = vmatpush3.bf16.msra.mxu0 %v635_v33 }
 0x174   :  { %v221_v25 = vpop.f32.mrb[0].mxu0 }
 0x175   :  { %v222_v26 = vadd.f32 %v486_v24, %v221_v25  ;;  %v558_v27 = vpop.f32.mrb[1].mxu0 }
 0x176   :  { %v224_v28 = vpop.f32.mrb[2].mxu0 }
 0x177   :  { %v227_v29 = vmax.f32 %v222_v26, 0.0  ;;  %v559_v30 = vpop.f32.mrb[3].mxu0 }
 0x179   :  { %v228_v31 = vpack.c.bf16 %v227_v29, %v227_v29 }
 0x17b   :  { %577 = vmatmul.mubr.bf16.vlgmr.msra.gmra.mrb[0].mxu1 %v228_v31 }
 0x24e   :  { %v334_v35 = vpop.f32.mrb[0].mxu1 }
 0x24f   :  { %v335_v36 = vadd.f32 %v495_v34, %v334_v35  ;;  %v578_v37 = vpop.f32.mrb[1].mxu1 }
 0x250   :  { %v337_v38 = vpop.f32.mrb[2].mxu1 }
 0x251   :  { %v340_v39 = vmax.f32 %v335_v36, 0.0  ;;  %v579_v40 = vpop.f32.mrb[3].mxu1 }
 0x253   :  { %v341_v41 = vpack.c.bf16 %v340_v39, %v340_v39 }
 0x255   :  { %597 = vmatmul.mubr.bf16.vlgmr.msra.gmra.mrb[4].mxu0 %v341_v41 }
 0x328   :  { %v447_v45 = vpop.f32.mrb[4].mxu0 }
 0x329   :  { %v448_v46 = vadd.f32 %v504_v43, %v447_v45  ;;  %v598_v47 = vpop.f32.mrb[5].mxu0 }
 0x32a   :  { %v450_v48 = vpop.f32.mrb[6].mxu0 }
 0x32b   :  { %v453_v49 = vmax.f32 %v448_v46, 0.0  ;;  %v599_v50 = vpop.f32.mrb[7].mxu0 }
 0x32d   :  { %v457_v51 = vsel %vm456_vm1, %v453_v49, -1e+30 }
 0x32e   :  { %458 = vmax.xlane.f32.xlu0 %v457_v51 }
 0x3bb   :  { %v459_v52 = vpop.xlane.xlu0 %458 }
 0x3bc   :  { %v460_v53 = vsub.f32 %v457_v51, %v459_v52 }
 0x3be   :  { %v461_v54 = vmul.f32 1.442695, %v460_v53 }
 0x3c0   :  { %636 = vpow2.f32 %v461_v54 }
 0x3ca   :  { %v637_v55 = vpop.eup %636 }
 0x3cb   :  { %463 = vadd.xlane.f32.xlu0 %v637_v55 }
 0x458   :  { %v464_v56 = vpop.xlane.xlu0 %463 }
 0x459   :  { %638 = vrcp.f32 %v464_v56 }
 0x463   :  { %v639_v57 = vpop.eup %638 }
 0x464   :  { %v466_v58 = vmul.f32 %v639_v57, %v637_v55 }
 0x466   :  { %467 = vst [vmem:[#allocation14] sm:$0xff] %v466_v58 }
 0x467   :  { %805 = shalt.err (!%p802_p4)
}
 0x468   :  { %s806_s15 = scalar_lea.hbm %s1020_s7, 128 }
 0x469   :  { %p807_p5 = scmp.ne.s32.totalorder %s1020_s7, %s806_s15  ;;  %p810_p6 = scmp.lt.u32.totalorder %s806_s15, %s1020_s7 }
 0x46b   :  { %p812_p7 = pnand %p810_p6, %p807_p5 }
 0x46d   :  { %815 = shalt.err (!%p812_p7)
}
 0x46e   :  { %477 = dma.vmem_to_hbm [thread:$0]  %s475_s13, 128, %s1020_s7, [#allocation4]  }
 0x46f   :  { %824 = dma.done.wait [#allocation4], 128  }
 0x470   :  { %825 = vsyncadd [#allocation4], 4294967168 }
 0x471   :  { %481 = vsyncpa [#allocation3], 1 }
 0x472   :  { %482 = vsyncpa [#allocation6], 1 }
 0x473   :  { %483 = vsyncpa [#allocation9], 1 }
 0x474   :  { %484 = vsyncpa [#allocation12], 1 }
 0x475   :  { %485 = vsyncpa [#allocation4], 1 }

// kernel: _mlp_forward_impl.1
= control target key start
LH: loop header
LB: loop body
LE: loop exit
PB: predicated region body
PF: predicated region fallthrough
CT: control target
= control target key end

     0   :  { %12 = vsyncpa [#allocation3], 0  ;;  %s1013_s0 = inlined_call_operand.hbm [shape: bf16[8,128], index: 0, kind: input, shape index: {}]   ;;  %s1014_s1 = inlined_call_operand.hbm [shape: bf16[128,128], index: 1, kind: input, shape index: {}]   ;;  %s1015_s2 = inlined_call_operand.hbm [shape: f32[1,128], index: 2, kind: input, shape index: {}]   ;;  %s1016_s3 = inlined_call_operand.hbm [shape: bf16[128,128], index: 3, kind: input, shape index: {}]   ;;  %s1017_s4 = inlined_call_operand.hbm [shape: f32[1,128], index: 4, kind: input, shape index: {}]   ;;  %s1018_s5 = inlined_call_operand.hbm [shape: bf16[128,128], index: 5, kind: input, shape index: {}]   ;;  %s1019_s6 = inlined_call_operand.hbm [shape: f32[1,128], index: 6, kind: input, shape index: {}]   ;;  %s1020_s7 = inlined_call_operand.hbm [shape: f32[8,128], index: 7, kind: output, shape index: {}]  }
   0x1   :  { %13 = vsyncpa [#allocation6], 0 }
   0x2   :  { %14 = vsyncpa [#allocation9], 0 }
   0x3   :  { %15 = vsyncpa [#allocation12], 0 }
   0x4   :  { %16 = vsyncpa [#allocation4], 0  ;;  %s826_s24 = smov [#allocation5]   ;;  %s640_s28 = scalar_lea.hbm %s1014_s1, 1024 }
   0x5   :  { %s32_s25 = sshll.u32 %s826_s24, 4  ;;  %p641_p0 = scmp.ne.s32.totalorder %s1014_s1, %s640_s28  ;;  %s33_s25 = int_to_ptr.vmem [resolvable:$true] %s32_s25 }
   0x6   :  { %p644_p1 = scmp.lt.u32.totalorder %s640_s28, %s1014_s1 }
   0x8   :  { %p646_p2 = pnand %p644_p1, %p641_p0 }
   0xa   :  { %649 = shalt.err (!%p646_p2)
}
   0xb   :  { %s650_s10 = scalar_lea.vmem %s33_s25, 1024  ;;  %p655_p4 = scmp.lt.s32.totalorder %s33_s25, %s33_s25 }
   0xc   :  { %p651_p3 = scmp.ne.s32.totalorder %s33_s25, %s650_s10  ;;  %p656_p5 = scmp.lt.s32.totalorder %s650_s10, %s650_s10 }
   0xe   :  { %p657_p6 = por %p656_p5, %p655_p4 }
  0x10   :  { %p658_p7 = pnand %p657_p6, %p651_p3 }
  0x12   :  { %661 = shalt.err (!%p658_p7)
}
  0x13   :  { %s827_s11 = smov 64   ;;  %s828_s12 = smov 4  }
  0x14   :  { %38 = dma.hbm_to_vmem [thread:$0]  %s1014_s1, 1024, %s33_s25, [#allocation6], %s827_s11, %s827_s11, %s828_s12  }
  0x15   :  { %s829_s15 = smov [#allocation8]   ;;  %s830_s17 = smov [#allocation11]  }
  0x16   :  { %s54_s16 = sshll.u32 %s829_s15, 4  ;;  %s76_s18 = sshll.u32 %s830_s17, 4  ;;  %s55_s16 = int_to_ptr.vmem [resolvable:$true] %s54_s16  ;;  %s77_s18 = int_to_ptr.vmem [resolvable:$true] %s76_s18 }
  0x17   :  { %s662_s21 = scalar_lea.hbm %s1016_s3, 1024 }
  0x18   :  { %p663_p8 = scmp.ne.s32.totalorder %s1016_s3, %s662_s21  ;;  %p666_p9 = scmp.lt.u32.totalorder %s662_s21, %s1016_s3 }
  0x1a   :  { %p668_p10 = pnand %p666_p9, %p663_p8 }
  0x1c   :  { %671 = shalt.err (!%p668_p10)
}
  0x1d   :  { %s672_s1 = scalar_lea.vmem %s55_s16, 1024  ;;  %p677_p12 = scmp.lt.s32.totalorder %s55_s16, %s55_s16 }
  0x1e   :  { %p673_p11 = scmp.ne.s32.totalorder %s55_s16, %s672_s1  ;;  %p678_p13 = scmp.lt.s32.totalorder %s672_s1, %s672_s1 }
  0x20   :  { %p679_p0 = por %p678_p13, %p677_p12 }
  0x22   :  { %p680_p1 = pnand %p679_p0, %p673_p11 }
  0x24   :  { %683 = shalt.err (!%p680_p1)
}
  0x25   :  { %60 = dma.hbm_to_vmem [thread:$0]  %s1016_s3, 1024, %s55_s16, [#allocation9], %s827_s11, %s827_s11, %s828_s12  }
  0x26   :  { %s684_s30 = scalar_lea.hbm %s1018_s5, 1024 }
  0x27   :  { %p685_p2 = scmp.ne.s32.totalorder %s1018_s5, %s684_s30  ;;  %p688_p3 = scmp.lt.u32.totalorder %s684_s30, %s1018_s5 }
  0x29   :  { %p690_p4 = pnand %p688_p3, %p685_p2 }
  0x2b   :  { %693 = shalt.err (!%p690_p4)
}
  0x2c   :  { %s694_s14 = scalar_lea.vmem %s77_s18, 1024  ;;  %p699_p6 = scmp.lt.s32.totalorder %s77_s18, %s77_s18 }
  0x2d   :  { %p695_p5 = scmp.ne.s32.totalorder %s77_s18, %s694_s14  ;;  %p700_p7 = scmp.lt.s32.totalorder %s694_s14, %s694_s14 }
  0x2f   :  { %p701_p8 = por %p700_p7, %p699_p6 }
  0x31   :  { %p702_p9 = pnand %p701_p8, %p695_p5 }
  0x33   :  { %705 = shalt.err (!%p702_p9)
}
  0x34   :  { %82 = dma.hbm_to_vmem [thread:$0]  %s1018_s5, 1024, %s77_s18, [#allocation12], %s827_s11, %s827_s11, %s828_s12  }
  0x35   :  { %s831_s16 = smov [#allocation2]   ;;  %s832_s19 = smov [#allocation7]  }
  0x36   :  { %s23_s17 = sshll.u32 %s831_s16, 4  ;;  %s45_s20 = sshll.u32 %s832_s19, 4  ;;  %s24_s17 = int_to_ptr.vmem [resolvable:$true] %s23_s17  ;;  %s46_s20 = int_to_ptr.vmem [resolvable:$true] %s45_s20 }
  0x37   :  { %s706_s23 = scalar_lea.hbm %s1013_s0, 64 }
  0x38   :  { %p707_p10 = scmp.ne.s32.totalorder %s1013_s0, %s706_s23  ;;  %p710_p11 = scmp.lt.u32.totalorder %s706_s23, %s1013_s0 }
  0x3a   :  { %p712_p12 = pnand %p710_p11, %p707_p10 }
  0x3c   :  { %715 = shalt.err (!%p712_p12)
}
  0x3d   :  { %s716_s5 = scalar_lea.vmem %s24_s17, 64  ;;  %p721_p0 = scmp.lt.s32.totalorder %s24_s17, %s24_s17 }
  0x3e   :  { %p717_p13 = scmp.ne.s32.totalorder %s24_s17, %s716_s5  ;;  %p722_p1 = scmp.lt.s32.totalorder %s716_s5, %s716_s5 }
  0x40   :  { %p723_p2 = por %p722_p1, %p721_p0 }
  0x42   :  { %p724_p3 = pnand %p723_p2, %p717_p13 }
  0x44   :  { %727 = shalt.err (!%p724_p3)
}
  0x45   :  { %26 = dma.hbm_to_vmem [thread:$0]  %s1013_s0, 64, %s24_s17, [#allocation3]  }
  0x46   :  { %s728_s28 = scalar_lea.hbm %s1015_s2, 16 }
  0x47   :  { %p729_p4 = scmp.ne.s32.totalorder %s1015_s2, %s728_s28  ;;  %p732_p5 = scmp.lt.u32.totalorder %s728_s28, %s1015_s2 }
  0x49   :  { %p734_p6 = pnand %p732_p5, %p729_p4 }
  0x4b   :  { %737 = shalt.err (!%p734_p6)
}
  0x4c   :  { %s738_s10 = scalar_lea.vmem %s46_s20, 16  ;;  %s742_s13 = scalar_lea.vmem %s46_s20, 32 }
  0x4d   :  { %p739_p7 = scmp.ne.s32.totalorder %s46_s20, %s738_s10  ;;  %p743_p8 = scmp.lt.s32.totalorder %s46_s20, %s46_s20 }
  0x4e   :  { %p744_p9 = scmp.lt.s32.totalorder %s742_s13, %s738_s10 }
  0x50   :  { %p745_p10 = por %p744_p9, %p743_p8 }
  0x52   :  { %p746_p11 = pnand %p745_p10, %p739_p7 }
  0x54   :  { %749 = shalt.err (!%p746_p11)
}
  0x55   :  { %48 = dma.hbm_to_vmem [thread:$0]  %s1015_s2, 16, %s46_s20, [#allocation6]  }
  0x56   :  { %s833_s3 = smov [#allocation10]   ;;  %s834_s16 = smov [#allocation13]  }
  0x57   :  { %s67_s15 = sshll.u32 %s833_s3, 4  ;;  %s89_s17 = sshll.u32 %s834_s16, 4  ;;  %s68_s15 = int_to_ptr.vmem [resolvable:$true] %s67_s15  ;;  %s90_s17 = int_to_ptr.vmem [resolvable:$true] %s89_s17 }
  0x58   :  { %s750_s22 = scalar_lea.hbm %s1017_s4, 16 }
  0x59   :  { %p751_p12 = scmp.ne.s32.totalorder %s1017_s4, %s750_s22  ;;  %p754_p13 = scmp.lt.u32.totalorder %s750_s22, %s1017_s4 }
  0x5b   :  { %p756_p0 = pnand %p754_p13, %p751_p12 }
  0x5d   :  { %759 = shalt.err (!%p756_p0)
}
  0x5e   :  { %s760_s2 = scalar_lea.vmem %s68_s15, 16  ;;  %s764_s20 = scalar_lea.vmem %s68_s15, 32 }
  0x5f   :  { %p761_p1 = scmp.ne.s32.totalorder %s68_s15, %s760_s2  ;;  %p765_p2 = scmp.lt.s32.totalorder %s68_s15, %s68_s15 }
  0x60   :  { %p766_p3 = scmp.lt.s32.totalorder %s764_s20, %s760_s2 }
  0x62   :  { %p767_p4 = por %p766_p3, %p765_p2 }
  0x64   :  { %p768_p5 = pnand %p767_p4, %p761_p1 }
  0x66   :  { %771 = shalt.err (!%p768_p5)
}
  0x67   :  { %70 = dma.hbm_to_vmem [thread:$0]  %s1017_s4, 16, %s68_s15, [#allocation9]  }
  0x68   :  { %s772_s18 = scalar_lea.hbm %s1019_s6, 16 }
  0x69   :  { %p773_p6 = scmp.ne.s32.totalorder %s1019_s6, %s772_s18  ;;  %p776_p7 = scmp.lt.u32.totalorder %s772_s18, %s1019_s6 }
  0x6b   :  { %p778_p8 = pnand %p776_p7, %p773_p6 }
  0x6d   :  { %781 = shalt.err (!%p778_p8)
}
  0x6e   :  { %s782_s8 = scalar_lea.vmem %s90_s17, 16  ;;  %s786_s9 = scalar_lea.vmem %s90_s17, 32 }
  0x6f   :  { %p783_p9 = scmp.ne.s32.totalorder %s90_s17, %s782_s8  ;;  %p787_p10 = scmp.lt.s32.totalorder %s90_s17, %s90_s17 }
  0x70   :  { %p788_p11 = scmp.lt.s32.totalorder %s786_s9, %s782_s8 }
  0x72   :  { %p789_p12 = por %p788_p11, %p787_p10 }
  0x74   :  { %p790_p13 = pnand %p789_p12, %p783_p9 }
  0x76   :  { %793 = shalt.err (!%p790_p13)
}
  0x77   :  { %92 = dma.hbm_to_vmem [thread:$0]  %s1019_s6, 16, %s90_s17, [#allocation12]  }
  0x78   :  { %816 = dma.done.wait [#allocation3], 64  }
  0x79   :  { %817 = vsyncadd [#allocation3], 4294967232 }
  0x7a   :  { %818 = dma.done.wait [#allocation6], 1040  }
  0x7b   :  { %819 = vsyncadd [#allocation6], 4294966256 }
  0x7c   :  { %820 = dma.done.wait [#allocation9], 1040  }
  0x7d   :  { %821 = vsyncadd [#allocation9], 4294966256 }
  0x7e   :  { %822 = dma.done.wait [#allocation12], 1040  }
  0x7f   :  { %823 = vsyncadd [#allocation12], 4294966256  ;;  %v835_v0 = vmov 0.0   ;;  %vm836_vm0 = vmmov 0   ;;  %v612_v1 = vld [vmem:[#allocation5] sm:$0xff]   ;;  %v613_v2 = vld [vmem:[#allocation5 + $0x8] sm:$0xff]   ;;  %v454_v42 = vlaneseq }
  0x80   :  { %540 = vmatprep.subr.bf16.mxu0 %v835_v0  ;;  %556 = vmatprep.mubr.msk.bf16.mxu0 %vm836_vm0, %v835_v0  ;;  %v614_v3 = vld [vmem:[#allocation5 + $0x10] sm:$0xff]   ;;  %v620_v4 = vld [vmem:[#allocation8] sm:$0xff]   ;;  %v615_v5 = vld [vmem:[#allocation5 + $0x18] sm:$0xff]   ;;  %s837_s6 = smov [#allocation14]  }
  0x81   :  { %560 = vmatprep.subr.bf16.mxu1 %v835_v0  ;;  %576 = vmatprep.mubr.msk.bf16.mxu1 %vm836_vm0, %v835_v0  ;;  %v621_v6 = vld [vmem:[#allocation8 + $0x8] sm:$0xff]   ;;  %v616_v7 = vld [vmem:[#allocation5 + $0x20] sm:$0xff]   ;;  %v622_v8 = vld [vmem:[#allocation8 + $0x10] sm:$0xff]   ;;  %v455_v44 = vand.u32 127, %v454_v42  ;;  %s474_s13 = sshll.u32 %s837_s6, 4  ;;  %s475_s13 = int_to_ptr.vmem [resolvable:$true] %s474_s13 }
  0x82   :  { %541 = vmatpush3.bf16.msra.mxu0 %v612_v1  ;;  %561 = vmatpush3.bf16.msra.mxu1 %v620_v4  ;;  %v617_v9 = vld [vmem:[#allocation5 + $0x28] sm:$0xff]   ;;  %v623_v10 = vld [vmem:[#allocation8 + $0x18] sm:$0xff]   ;;  %v618_v11 = vld [vmem:[#allocation5 + $0x30] sm:$0xff]   ;;  %s794_s0 = scalar_lea.vmem %s475_s13, 128  ;;  %p799_p1 = scmp.lt.s32.totalorder %s475_s13, %s475_s13 }
  0x83   :  { %542 = vmatprep.subr.bf16.mxu0 %v835_v0  ;;  %562 = vmatprep.subr.bf16.mxu1 %v835_v0  ;;  %v624_v12 = vld [vmem:[#allocation8 + $0x20] sm:$0xff]   ;;  %v619_v13 = vld [vmem:[#allocation5 + $0x38] sm:$0xff]   ;;  %v625_v14 = vld [vmem:[#allocation8 + $0x28] sm:$0xff]   ;;  %vm456_vm1 = vcmp.lt.s32.totalorder %v455_v44, 16  ;;  %p795_p0 = scmp.ne.s32.totalorder %s475_s13, %s794_s0  ;;  %p800_p2 = scmp.lt.s32.totalorder %s794_s0, %s794_s0 }
  0x84   :  { %v115_v15 = vld [vmem:[#allocation2] sm:$0xf]  ;;  %v626_v16 = vld [vmem:[#allocation8 + $0x30] sm:$0xff]   ;;  %v628_v18 = vld [vmem:[#allocation11] sm:$0xff]  }
  0x85   :  { %v627_v17 = vld [vmem:[#allocation8 + $0x38] sm:$0xff]   ;;  %v629_v19 = vld [vmem:[#allocation11 + $0x8] sm:$0xff]   ;;  %v632_v22 = vld [vmem:[#allocation11 + $0x20] sm:$0xff]   ;;  %p801_p3 = por %p800_p2, %p799_p1 }
  0x86   :  { %543 = vmatpush3.bf16.msra.mxu0 %v613_v2  ;;  %563 = vmatpush3.bf16.msra.mxu1 %v621_v6  ;;  %v630_v20 = vld [vmem:[#allocation11 + $0x10] sm:$0xff]   ;;  %v631_v21 = vld [vmem:[#allocation11 + $0x18] sm:$0xff]   ;;  %v633_v23 = vld [vmem:[#allocation11 + $0x28] sm:$0xff]  }
  0x87   :  { %544 = vmatprep.subr.bf16.mxu0 %v835_v0  ;;  %564 = vmatprep.subr.bf16.mxu1 %v835_v0  ;;  %v486_v24 = vld [vmem:[#allocation7] ss:$0 sm:$0xff]  ;;  %v634_v32 = vld [vmem:[#allocation11 + $0x30] sm:$0xff]   ;;  %v495_v34 = vld [vmem:[#allocation10] ss:$0 sm:$0xff]  ;;  %p802_p4 = pnand %p801_p3, %p795_p0 }
  0x88   :  { %v635_v33 = vld [vmem:[#allocation11 + $0x38] sm:$0xff]   ;;  %v504_v43 = vld [vmem:[#allocation13] ss:$0 sm:$0xff] }
  0x8a   :  { %545 = vmatpush3.bf16.msra.mxu0 %v614_v3  ;;  %565 = vmatpush3.bf16.msra.mxu1 %v622_v8 }
  0x8b   :  { %546 = vmatprep.subr.bf16.mxu0 %v835_v0  ;;  %566 = vmatprep.subr.bf16.mxu1 %v835_v0 }
  0x8e   :  { %547 = vmatpush3.bf16.msra.mxu0 %v615_v5  ;;  %567 = vmatpush3.bf16.msra.mxu1 %v623_v10 }
  0x8f   :  { %548 = vmatprep.subr.bf16.mxu0 %v835_v0  ;;  %568 = vmatprep.subr.bf16.mxu1 %v835_v0 }
  0x92   :  { %549 = vmatpush3.bf16.msra.mxu0 %v616_v7  ;;  %569 = vmatpush3.bf16.msra.mxu1 %v624_v12 }
  0x93   :  { %550 = vmatprep.subr.bf16.mxu0 %v835_v0  ;;  %570 = vmatprep.subr.bf16.mxu1 %v835_v0 }
  0x96   :  { %551 = vmatpush3.bf16.msra.mxu0 %v617_v9  ;;  %571 = vmatpush3.bf16.msra.mxu1 %v625_v14 }
  0x97   :  { %552 = vmatprep.subr.bf16.mxu0 %v835_v0  ;;  %572 = vmatprep.subr.bf16.mxu1 %v835_v0 }
  0x9a   :  { %553 = vmatpush3.bf16.msra.mxu0 %v618_v11  ;;  %573 = vmatpush3.bf16.msra.mxu1 %v626_v16 }
  0x9b   :  { %554 = vmatprep.subr.bf16.mxu0 %v835_v0  ;;  %574 = vmatprep.subr.bf16.mxu1 %v835_v0 }
  0x9e   :  { %555 = vmatpush3.bf16.msra.mxu0 %v619_v13  ;;  %575 = vmatpush3.bf16.msra.mxu1 %v627_v17 }
  0x9f   :  { %580 = vmatprep.subr.bf16.mxu0 %v835_v0 }
  0xa1   :  { %557 = vmatmul.mubr.bf16.vlgmr.msra.gmra.mrb[0].mxu0 %v115_v15 }
  0xa2   :  { %596 = vmatprep.mubr.msk.bf16.mxu0 %vm836_vm0, %v835_v0  ;;  %581 = vmatpush3.bf16.msra.mxu0 %v628_v18 }
  0xa3   :  { %582 = vmatprep.subr.bf16.mxu0 %v835_v0 }
  0xa6   :  { %583 = vmatpush3.bf16.msra.mxu0 %v629_v19 }
  0xa7   :  { %584 = vmatprep.subr.bf16.mxu0 %v835_v0 }
  0xaa   :  { %585 = vmatpush3.bf16.msra.mxu0 %v630_v20 }
  0xab   :  { %586 = vmatprep.subr.bf16.mxu0 %v835_v0 }
  0xae   :  { %587 = vmatpush3.bf16.msra.mxu0 %v631_v21 }
  0xaf   :  { %588 = vmatprep.subr.bf16.mxu0 %v835_v0 }
  0xb2   :  { %589 = vmatpush3.bf16.msra.mxu0 %v632_v22 }
  0xb3   :  { %590 = vmatprep.subr.bf16.mxu0 %v835_v0 }
  0xb6   :  { %591 = vmatpush3.bf16.msra.mxu0 %v633_v23 }
  0xb7   :  { %592 = vmatprep.subr.bf16.mxu0 %v835_v0 }
  0xba   :  { %593 = vmatpush3.bf16.msra.mxu0 %v634_v32 }
  0xbb   :  { %594 = vmatprep.subr.bf16.mxu0 %v835_v0 }
  0xbe   :  { %595 = vmatpush3.bf16.msra.mxu0 %v635_v33 }
 0x174   :  { %v221_v25 = vpop.f32.mrb[0].mxu0 }
 0x175   :  { %v222_v26 = vadd.f32 %v486_v24, %v221_v25  ;;  %v558_v27 = vpop.f32.mrb[1].mxu0 }
 0x176   :  { %v224_v28 = vpop.f32.mrb[2].mxu0 }
 0x177   :  { %v227_v29 = vmax.f32 %v222_v26, 0.0  ;;  %v559_v30 = vpop.f32.mrb[3].mxu0 }
 0x179   :  { %v228_v31 = vpack.c.bf16 %v227_v29, %v227_v29 }
 0x17b   :  { %577 = vmatmul.mubr.bf16.vlgmr.msra.gmra.mrb[0].mxu1 %v228_v31 }
 0x24e   :  { %v334_v35 = vpop.f32.mrb[0].mxu1 }
 0x24f   :  { %v335_v36 = vadd.f32 %v495_v34, %v334_v35  ;;  %v578_v37 = vpop.f32.mrb[1].mxu1 }
 0x250   :  { %v337_v38 = vpop.f32.mrb[2].mxu1 }
 0x251   :  { %v340_v39 = vmax.f32 %v335_v36, 0.0  ;;  %v579_v40 = vpop.f32.mrb[3].mxu1 }
 0x253   :  { %v341_v41 = vpack.c.bf16 %v340_v39, %v340_v39 }
 0x255   :  { %597 = vmatmul.mubr.bf16.vlgmr.msra.gmra.mrb[4].mxu0 %v341_v41 }
 0x328   :  { %v447_v45 = vpop.f32.mrb[4].mxu0 }
 0x329   :  { %v448_v46 = vadd.f32 %v504_v43, %v447_v45  ;;  %v598_v47 = vpop.f32.mrb[5].mxu0 }
 0x32a   :  { %v450_v48 = vpop.f32.mrb[6].mxu0 }
 0x32b   :  { %v453_v49 = vmax.f32 %v448_v46, 0.0  ;;  %v599_v50 = vpop.f32.mrb[7].mxu0 }
 0x32d   :  { %v457_v51 = vsel %vm456_vm1, %v453_v49, -1e+30 }
 0x32e   :  { %458 = vmax.xlane.f32.xlu0 %v457_v51 }
 0x3bb   :  { %v459_v52 = vpop.xlane.xlu0 %458 }
 0x3bc   :  { %v460_v53 = vsub.f32 %v457_v51, %v459_v52 }
 0x3be   :  { %v461_v54 = vmul.f32 1.442695, %v460_v53 }
 0x3c0   :  { %636 = vpow2.f32 %v461_v54 }
 0x3ca   :  { %v637_v55 = vpop.eup %636 }
 0x3cb   :  { %463 = vadd.xlane.f32.xlu0 %v637_v55 }
 0x458   :  { %v464_v56 = vpop.xlane.xlu0 %463 }
 0x459   :  { %638 = vrcp.f32 %v464_v56 }
 0x463   :  { %v639_v57 = vpop.eup %638 }
 0x464   :  { %v466_v58 = vmul.f32 %v639_v57, %v637_v55 }
 0x466   :  { %467 = vst [vmem:[#allocation14] sm:$0xff] %v466_v58 }
 0x467   :  { %805 = shalt.err (!%p802_p4)
}
 0x468   :  { %s806_s15 = scalar_lea.hbm %s1020_s7, 128 }
 0x469   :  { %p807_p5 = scmp.ne.s32.totalorder %s1020_s7, %s806_s15  ;;  %p810_p6 = scmp.lt.u32.totalorder %s806_s15, %s1020_s7 }
 0x46b   :  { %p812_p7 = pnand %p810_p6, %p807_p5 }
 0x46d   :  { %815 = shalt.err (!%p812_p7)
}
 0x46e   :  { %477 = dma.vmem_to_hbm [thread:$0]  %s475_s13, 128, %s1020_s7, [#allocation4]  }
 0x46f   :  { %824 = dma.done.wait [#allocation4], 128  }
 0x470   :  { %825 = vsyncadd [#allocation4], 4294967168 }
 0x471   :  { %481 = vsyncpa [#allocation3], 1 }
 0x472   :  { %482 = vsyncpa [#allocation6], 1 }
 0x473   :  { %483 = vsyncpa [#allocation9], 1 }
 0x474   :  { %484 = vsyncpa [#allocation12], 1 }
 0x475   :  { %485 = vsyncpa [#allocation4], 1 }

</bundles_post_ra>
